<compile_context>
chip_gen: v6e
topology: v6e:2x2x1
jax: 0.10.0
libtpu: 0.0.40
codegen_flags: <defaults>
</compile_context>

<pallas_src>
from functools import partial
from math import sqrt

import jax
import jax.numpy as jnp
from jax import lax
from jax.experimental import pallas as pl
from jax.experimental.pallas import tpu as pltpu


def _flash_attn_kernel(q_ref, k_ref, v_ref, o_ref, m_sc, l_sc, acc_sc,
                       *, kv_valid, kv_tile, mask_kv):
    """One grid step = (batch b, Q tile qi, KV tile ki); KV axis is innermost."""
    kv_idx = pl.program_id(2)
    n_kv = pl.num_programs(2)

    @pl.when(kv_idx == 0)
    def _init():
        m_sc[...] = jnp.full(m_sc.shape, -jnp.inf, dtype=m_sc.dtype)
        l_sc[...] = jnp.zeros(l_sc.shape, dtype=l_sc.dtype)
        acc_sc[...] = jnp.zeros(acc_sc.shape, dtype=acc_sc.dtype)

    q = q_ref[...]                      # (tq, D), already scaled by 1/sqrt(D)
    k = k_ref[...]                      # (tk, D)
    v = v_ref[...]                      # (tk, D)

    # scores = q @ k^T, contracting the last dims directly (no XLU transpose),
    # f32 accumulation on the MXU.
    s = lax.dot_general(q, k, (((1,), (1,)), ((), ())),
                        preferred_element_type=jnp.float32)   # (tq, tk)

    if mask_kv:  # static flag: sequence was padded up to a KV-tile multiple
        col = kv_idx * kv_tile + lax.broadcasted_iota(jnp.int32, s.shape, 1)
        s = jnp.where(col < kv_valid, s, -jnp.inf)

    # Online (flash) softmax update; all statistics stay f32.
    m_prev = m_sc[...]
    m_new = jnp.maximum(m_prev, jnp.max(s, axis=-1, keepdims=True))
    alpha = jnp.exp(m_prev - m_new)
    p = jnp.exp(s - m_new)
    l_sc[...] = alpha * l_sc[...] + jnp.sum(p, axis=-1, keepdims=True)
    acc_sc[...] = alpha * acc_sc[...] + jnp.dot(
        p.astype(v.dtype), v, preferred_element_type=jnp.float32)
    m_sc[...] = m_new

    @pl.when(kv_idx == n_kv - 1)
    def _finalize():
        l = l_sc[...]
        # EUP approximate reciprocal (free slot) + one Newton step on the tiny
        # (tq, 1) vector -> essentially exact f32 normalization for ~zero cost.
        r = pl.reciprocal(l, approx=True)
        r = r * (2.0 - l * r)
        o_ref[...] = (acc_sc[...] * r).astype(o_ref.dtype)


def _round_up(x, m):
    return ((x + m - 1) // m) * m


def _flash_attention(q, k, v, *, q_tile=512, kv_tile=512):
    """q, k, v: (B, S, D); q must already carry the 1/sqrt(D) scale.
    Returns softmax(q k^T) v via a tiled online-softmax Pallas kernel."""
    B, S, D = q.shape
    itemsize = jnp.dtype(q.dtype).itemsize
    # Sublane packing of the second-minor dim: f32 -> 8, bf16 -> 16, int8 -> 32.
    sublane = max(8, 32 // max(1, itemsize))

    # Q tile: multiple of the sublane packing. KV tile: multiple of 128 (lane
    # dim of the score tile) when S allows it, else the sublane multiple.
    tq = _round_up(min(q_tile, S), sublane)
    kv_mult = 128 if S >= 128 else sublane
    tk = _round_up(min(kv_tile, S), kv_mult)

    # v7x shards the leading "parallel" grid axes across its 2 TensorCores:
    # keep at least 2 (b, qi) work units when the sequence allows it.
    while (B * (_round_up(S, tq) // tq) < 2 and tq > sublane
           and (tq // 2) % sublane == 0):
        tq //= 2

    s_q = _round_up(S, tq)
    s_kv = _round_up(S, tk)
    n_q = s_q // tq
    n_kv = s_kv // tk
    mask_kv = s_kv != S

    if s_q != S:
        q = jnp.pad(q, ((0, 0), (0, s_q - S), (0, 0)))
    if s_kv != S:
        k = jnp.pad(k, ((0, 0), (0, s_kv - S), (0, 0)))
        v = jnp.pad(v, ((0, 0), (0, s_kv - S), (0, 0)))

    grid = (B, n_q, n_kv)

    # VMEM: double-buffered q/k/v/out tiles + f32 scratch.  For the 512-tile
    # defaults and realistic D this stays far below v7x's 64 MiB budget.
    vmem_est = (2 * (2 * tq * D + 2 * tk * D) * itemsize
                + (tq * D + 2 * tq) * 4)
    vmem_limit = int(min(48 * 1024 * 1024, max(32 * 1024 * 1024, 2 * vmem_est)))

    flops = int(4 * B * s_q * s_kv * D)          # Q@K^T + P@V
    transcendentals = int(B * s_q * s_kv)        # exp
    bytes_accessed = int(itemsize * B * (2 * s_q * D            # q + out
                                         + 2 * n_q * s_kv * D))  # k, v per q tile

    kernel = partial(_flash_attn_kernel, kv_valid=S, kv_tile=tk, mask_kv=mask_kv)

    out = pl.pallas_call(
        kernel,
        out_shape=jax.ShapeDtypeStruct((B, s_q, D), q.dtype),
        grid_spec=pltpu.PrefetchScalarGridSpec(
            num_scalar_prefetch=0,
            grid=grid,
            in_specs=[
                pl.BlockSpec((None, tq, D), lambda b, qi, ki: (b, qi, 0)),  # q
                pl.BlockSpec((None, tk, D), lambda b, qi, ki: (b, ki, 0)),  # k
                pl.BlockSpec((None, tk, D), lambda b, qi, ki: (b, ki, 0)),  # v
            ],
            out_specs=pl.BlockSpec((None, tq, D), lambda b, qi, ki: (b, qi, 0)),
            scratch_shapes=[
                pltpu.VMEM((tq, 1), jnp.float32),   # running max m
                pltpu.VMEM((tq, 1), jnp.float32),   # running sum l
                pltpu.VMEM((tq, D), jnp.float32),   # output accumulator
            ],
        ),
        compiler_params=pltpu.CompilerParams(
            dimension_semantics=("parallel", "parallel", "arbitrary"),
            vmem_limit_bytes=vmem_limit),
        cost_estimate=pl.CostEstimate(flops=flops,
                                      transcendentals=transcendentals,
                                      bytes_accessed=bytes_accessed),
    )(q, k, v)

    return out[:, :S, :] if s_q != S else out


def single_head_attention(x, w_qkv, b_qkv, w_proj, b_proj,
                          *, q_tile=512, kv_tile=512):
    """Forward pass of SingleHeadAttention.

    x: (B, S, H); w_qkv: (H, 3*H//4) [torch weight transposed]; b_qkv: (3*H//4,);
    w_proj: (H//4, H) [transposed]; b_proj: (H,).

    The QKV / output projections run once as plain XLA GEMMs in the wrapper;
    the O(S^2) attention is the fused flash Pallas kernel above.
    """
    B, S, H = x.shape
    assert H % 4 == 0
    D = H // 4
    assert w_qkv.shape == (H, 3 * D)
    assert b_qkv.shape == (3 * D,)
    assert w_proj.shape == (D, H)
    assert b_proj.shape == (H,)

    qkv = (x @ w_qkv + b_qkv).reshape(B, S, 3, D)
    # PyTorch: reshape(B, S, 3, D).unbind(dim=2) -> (query, value, key).
    query, value, key = qkv[:, :, 0], qkv[:, :, 1], qkv[:, :, 2]

    # Fold the 1/sqrt(D) softmax scale into Q (zero in-kernel cost).
    query = query * (1.0 / sqrt(float(D)))

    encoded = _flash_attention(query, key, value,
                               q_tile=q_tile, kv_tile=kv_tile)
    return encoded @ w_proj + b_proj


def reference_jax(x, w_qkv, b_qkv, w_proj, b_proj):
    """Pure-JAX reference mirroring the PyTorch forward exactly."""
    B, S, H = x.shape
    D = H // 4
    qkv = (x @ w_qkv + b_qkv).reshape(B, S, 3, D)
    query, value, key = qkv[:, :, 0], qkv[:, :, 1], qkv[:, :, 2]
    atten = (query @ jnp.swapaxes(key, -2, -1)) / sqrt(float(D))
    scores = jax.nn.softmax(atten, axis=-1)
    encoded = scores @ value
    return encoded @ w_proj + b_proj


def _make_inputs(key, B, S, H, dtype=jnp.float32):
    D = H // 4
    kx, kw1, kb1, kw2, kb2 = jax.random.split(key, 5)
    x = jax.random.normal(kx, (B, S, H), dtype=dtype)
    # nn.Linear(H, 3*D): torch weight (3D, H) -> pass transposed (H, 3D).
    w_qkv = jax.random.normal(kw1, (H, 3 * D), dtype=dtype) * 0.1
    b_qkv = jax.random.normal(kb1, (3 * D,), dtype=dtype) * 0.1
    # nn.Linear(D, H): torch weight (H, D) -> pass transposed (D, H).
    w_proj = jax.random.normal(kw2, (D, H), dtype=dtype) * 0.1
    b_proj = jax.random.normal(kb2, (H,), dtype=dtype) * 0.1
    return x, w_qkv, b_qkv, w_proj, b_proj


if __name__ == "__main__":
    key0 = jax.random.PRNGKey(0)
    k_small, k_mask, k_large = jax.random.split(key0, 3)

    # Tolerance accounts for TPU default matmul precision (bf16 MXU passes) in
    # the XLA reference vs the in-kernel MXU path; real bugs give O(0.1+) errors.
    ATOL = RTOL = 2e-2

    # Small deterministic setup matching the module: batch=2, seq=8, hidden=32.
    args_small = _make_inputs(k_small, B=2, S=8, H=32)
    out_small = jax.block_until_ready(single_head_attention(*args_small))
    ref_small = reference_jax(*args_small)
    assert out_small.shape == ref_small.shape
    assert jnp.allclose(out_small, ref_small, atol=ATOL, rtol=RTOL), \
        "mismatch vs reference (small)"

    # Awkward sequence length: exercises multiple Q/KV tiles, padding + masking.
    args_mask = _make_inputs(k_mask, B=2, S=300, H=64)
    out_mask = jax.block_until_ready(
        single_head_attention(*args_mask, q_tile=128, kv_tile=128))
    ref_mask = reference_jax(*args_mask)
    assert out_mask.shape == ref_mask.shape
    assert jnp.allclose(out_mask, ref_mask, atol=ATOL, rtol=RTOL), \
        "mismatch vs reference (tiled + masked)"

    # Larger check at the default 512 tiles.
    args_large = _make_inputs(k_large, B=2, S=512, H=128)
    out_large = jax.block_until_ready(single_head_attention(*args_large))
    ref_large = reference_jax(*args_large)
    assert out_large.shape == ref_large.shape
    assert jnp.allclose(out_large, ref_large, atol=ATOL, rtol=RTOL), \
        "mismatch vs reference (large)"

    print("KERNEL_OK")
</pallas_src>

<mosaic_0001>
module attributes {stable_mosaic.version = 11 : i64} {
  func.func @_flash_attn_kernel(%arg0: i32, %arg1: i32, %arg2: i32, %arg3: memref<1x8x8xf32, #tpu.memory_space<vmem>>, %arg4: memref<1x8x8xf32, #tpu.memory_space<vmem>>, %arg5: memref<1x8x8xf32, #tpu.memory_space<vmem>>, %arg6: memref<1x8x8xf32, #tpu.memory_space<vmem>>, %arg7: memref<8x1xf32, #tpu.memory_space<vmem>>, %arg8: memref<8x1xf32, #tpu.memory_space<vmem>>, %arg9: memref<8x8xf32, #tpu.memory_space<vmem>>) attributes {dimension_semantics = [#tpu.dimension_semantics<parallel>, #tpu.dimension_semantics<parallel>, #tpu.dimension_semantics<arbitrary>], iteration_bounds = array<i64: 2, 1, 1>, scalar_prefetch = 0 : i64, scratch_operands = 3 : i64, tpu.core_type = #tpu.core_type<tc>, window_params = [{transform_indices = @transform_0, window_bounds = array<i64: 1, 8, 8>}, {transform_indices = @transform_1, window_bounds = array<i64: 1, 8, 8>}, {transform_indices = @transform_2, window_bounds = array<i64: 1, 8, 8>}, {transform_indices = @transform_3, window_bounds = array<i64: 1, 8, 8>}]} {
    %c0_i32 = arith.constant 0 : i32
    %0 = arith.cmpi eq, %arg2, %c0_i32 : i32
    %1 = arith.extui %0 : i1 to i32
    %c0_i32_0 = arith.constant 0 : i32
    %2 = arith.cmpi ne, %1, %c0_i32_0 : i32
    scf.if %2 {
      %cst_26 = arith.constant 0xFF800000 : f32
      %35 = vector.broadcast %cst_26 : f32 to vector<8x1xf32>
      %c0_27 = arith.constant 0 : index
      %c0_28 = arith.constant 0 : index
      %36 = vector.load %arg7[%c0_27, %c0_28] : memref<8x1xf32, #tpu.memory_space<vmem>>, vector<8x1xf32>
      tpu.vector_store %arg7[%c0_27, %c0_28], %35 {strides = array<i32>} : memref<8x1xf32, #tpu.memory_space<vmem>>, vector<8x1xf32>,
      %cst_29 = arith.constant 0.000000e+00 : f32
      %37 = vector.broadcast %cst_29 : f32 to vector<8x1xf32>
      %c0_30 = arith.constant 0 : index
      %c0_31 = arith.constant 0 : index
      %38 = vector.load %arg8[%c0_30, %c0_31] : memref<8x1xf32, #tpu.memory_space<vmem>>, vector<8x1xf32>
      tpu.vector_store %arg8[%c0_30, %c0_31], %37 {strides = array<i32>} : memref<8x1xf32, #tpu.memory_space<vmem>>, vector<8x1xf32>,
      %cst_32 = arith.constant 0.000000e+00 : f32
      %39 = vector.broadcast %cst_32 : f32 to vector<8x8xf32>
      %c0_33 = arith.constant 0 : index
      %c0_34 = arith.constant 0 : index
      %40 = vector.load %arg9[%c0_33, %c0_34] : memref<8x8xf32, #tpu.memory_space<vmem>>, vector<8x8xf32>
      tpu.vector_store %arg9[%c0_33, %c0_34], %39 {strides = array<i32>} : memref<8x8xf32, #tpu.memory_space<vmem>>, vector<8x8xf32>,
    } else {
    }
    %c0 = arith.constant 0 : index
    %c0_1 = arith.constant 0 : index
    %c0_2 = arith.constant 0 : index
    %3 = vector.load %arg3[%c0, %c0_1, %c0_2] : memref<1x8x8xf32, #tpu.memory_space<vmem>>, vector<1x8x8xf32>
    %4 = vector.shape_cast %3 : vector<1x8x8xf32> to vector<8x8xf32>
    %c0_3 = arith.constant 0 : index
    %c0_4 = arith.constant 0 : index
    %c0_5 = arith.constant 0 : index
    %5 = vector.load %arg4[%c0_3, %c0_4, %c0_5] : memref<1x8x8xf32, #tpu.memory_space<vmem>>, vector<1x8x8xf32>
    %6 = vector.shape_cast %5 : vector<1x8x8xf32> to vector<8x8xf32>
    %c0_6 = arith.constant 0 : index
    %c0_7 = arith.constant 0 : index
    %c0_8 = arith.constant 0 : index
    %7 = vector.load %arg5[%c0_6, %c0_7, %c0_8] : memref<1x8x8xf32, #tpu.memory_space<vmem>>, vector<1x8x8xf32>
    %8 = vector.shape_cast %7 : vector<1x8x8xf32> to vector<8x8xf32>
    %cst = arith.constant dense<0.000000e+00> : vector<8x8xf32>
    %9 = tpu.matmul %4, %6, %cst {dimension_numbers = #tpu.dot_dimension_numbers<[1], [1], [0], [0], [0, 0, 1, 0], [], []>} : vector<8x8xf32>, vector<8x8xf32>, vector<8x8xf32> -> vector<8x8xf32>
    %c0_9 = arith.constant 0 : index
    %c0_10 = arith.constant 0 : index
    %10 = vector.load %arg7[%c0_9, %c0_10] : memref<8x1xf32, #tpu.memory_space<vmem>>, vector<8x1xf32>
    %cst_11 = arith.constant dense<0xFF800000> : vector<8xf32>
    %11 = vector.multi_reduction <maximumf>, %9, %cst_11 [1] : vector<8x8xf32> to vector<8xf32>
    %12 = vector.shape_cast %11 : vector<8xf32> to vector<8x1xf32>
    %13 = arith.maximumf %10, %12 : vector<8x1xf32>
    %14 = arith.subf %10, %13 : vector<8x1xf32>
    %15 = math.exp %14 : vector<8x1xf32>
    %16 = vector.broadcast %13 : vector<8x1xf32> to vector<8x8xf32>
    %17 = arith.subf %9, %16 : vector<8x8xf32>
    %18 = math.exp %17 : vector<8x8xf32>
    %c0_12 = arith.constant 0 : index
    %c0_13 = arith.constant 0 : index
    %19 = vector.load %arg8[%c0_12, %c0_13] : memref<8x1xf32, #tpu.memory_space<vmem>>, vector<8x1xf32>
    %20 = arith.mulf %15, %19 : vector<8x1xf32>
    %cst_14 = arith.constant dense<0.000000e+00> : vector<8xf32>
    %21 = vector.multi_reduction <add>, %18, %cst_14 [1] : vector<8x8xf32> to vector<8xf32>
    %22 = vector.shape_cast %21 : vector<8xf32> to vector<8x1xf32>
    %23 = arith.addf %20, %22 : vector<8x1xf32>
    %c0_15 = arith.constant 0 : index
    %c0_16 = arith.constant 0 : index
    %24 = vector.load %arg8[%c0_15, %c0_16] : memref<8x1xf32, #tpu.memory_space<vmem>>, vector<8x1xf32>
    tpu.vector_store %arg8[%c0_15, %c0_16], %23 {strides = array<i32>} : memref<8x1xf32, #tpu.memory_space<vmem>>, vector<8x1xf32>,
    %c0_17 = arith.constant 0 : index
    %c0_18 = arith.constant 0 : index
    %25 = vector.load %arg9[%c0_17, %c0_18] : memref<8x8xf32, #tpu.memory_space<vmem>>, vector<8x8xf32>
    %26 = vector.broadcast %15 : vector<8x1xf32> to vector<8x8xf32>
    %27 = arith.mulf %26, %25 : vector<8x8xf32>
    %cst_19 = arith.constant dense<0.000000e+00> : vector<8x8xf32>
    %28 = tpu.matmul %18, %8, %cst_19 {dimension_numbers = #tpu.dot_dimension_numbers<[1], [0], [0], [1], [0, 0, 1, 1], [], []>} : vector<8x8xf32>, vector<8x8xf32>, vector<8x8xf32> -> vector<8x8xf32>
    %29 = arith.addf %27, %28 : vector<8x8xf32>
    %c0_20 = arith.constant 0 : index
    %c0_21 = arith.constant 0 : index
    %30 = vector.load %arg9[%c0_20, %c0_21] : memref<8x8xf32, #tpu.memory_space<vmem>>, vector<8x8xf32>
    tpu.vector_store %arg9[%c0_20, %c0_21], %29 {strides = array<i32>} : memref<8x8xf32, #tpu.memory_space<vmem>>, vector<8x8xf32>,
    %c0_22 = arith.constant 0 : index
    %c0_23 = arith.constant 0 : index
    %31 = vector.load %arg7[%c0_22, %c0_23] : memref<8x1xf32, #tpu.memory_space<vmem>>, vector<8x1xf32>
    tpu.vector_store %arg7[%c0_22, %c0_23], %13 {strides = array<i32>} : memref<8x1xf32, #tpu.memory_space<vmem>>, vector<8x1xf32>,
    %c0_i32_24 = arith.constant 0 : i32
    %32 = arith.cmpi eq, %arg2, %c0_i32_24 : i32
    %33 = arith.extui %32 : i1 to i32
    %c0_i32_25 = arith.constant 0 : i32
    %34 = arith.cmpi ne, %33, %c0_i32_25 : i32
    scf.if %34 {
      %c0_26 = arith.constant 0 : index
      %c0_27 = arith.constant 0 : index
      %35 = vector.load %arg8[%c0_26, %c0_27] : memref<8x1xf32, #tpu.memory_space<vmem>>, vector<8x1xf32>
      %36 = tpu.reciprocal %35 {approx = true} : vector<8x1xf32> -> vector<8x1xf32>
      %37 = arith.mulf %35, %36 : vector<8x1xf32>
      %cst_28 = arith.constant 2.000000e+00 : f32
      %38 = vector.broadcast %cst_28 : f32 to vector<8x1xf32>
      %39 = arith.subf %38, %37 : vector<8x1xf32>
      %40 = arith.mulf %36, %39 : vector<8x1xf32>
      %c0_29 = arith.constant 0 : index
      %c0_30 = arith.constant 0 : index
      %41 = vector.load %arg9[%c0_29, %c0_30] : memref<8x8xf32, #tpu.memory_space<vmem>>, vector<8x8xf32>
      %42 = vector.broadcast %40 : vector<8x1xf32> to vector<8x8xf32>
      %43 = arith.mulf %41, %42 : vector<8x8xf32>
      %c0_31 = arith.constant 0 : index
      %c0_32 = arith.constant 0 : index
      %c0_33 = arith.constant 0 : index
      %44 = vector.load %arg6[%c0_31, %c0_32, %c0_33] : memref<1x8x8xf32, #tpu.memory_space<vmem>>, vector<1x8x8xf32>
      %45 = vector.shape_cast %44 : vector<1x8x8xf32> to vector<8x8xf32>
      %46 = vector.shape_cast %43 : vector<8x8xf32> to vector<1x8x8xf32>
      tpu.vector_store %arg6[%c0_31, %c0_32, %c0_33], %46 {strides = array<i32>} : memref<1x8x8xf32, #tpu.memory_space<vmem>>, vector<1x8x8xf32>,
    } else {
    }
    return
  }
  func.func @transform_0(%arg0: i32, %arg1: i32, %arg2: i32) -> (i32, i32, i32) {
    %c0_i32 = arith.constant 0 : i32
    %c0_i32_0 = arith.constant 0 : i32
    return %arg0, %arg1, %c0_i32 : i32, i32, i32
  }
  func.func @transform_1(%arg0: i32, %arg1: i32, %arg2: i32) -> (i32, i32, i32) {
    %c0_i32 = arith.constant 0 : i32
    %c0_i32_0 = arith.constant 0 : i32
    return %arg0, %arg2, %c0_i32 : i32, i32, i32
  }
  func.func @transform_2(%arg0: i32, %arg1: i32, %arg2: i32) -> (i32, i32, i32) {
    %c0_i32 = arith.constant 0 : i32
    %c0_i32_0 = arith.constant 0 : i32
    return %arg0, %arg2, %c0_i32 : i32, i32, i32
  }
  func.func @transform_3(%arg0: i32, %arg1: i32, %arg2: i32) -> (i32, i32, i32) {
    %c0_i32 = arith.constant 0 : i32
    %c0_i32_0 = arith.constant 0 : i32
    return %arg0, %arg1, %c0_i32 : i32, i32, i32
  }
}

</mosaic_0001>

<bundles_post_ra>
// kernel: tpu_custom_call.1
= control target key start
LH: loop header
LB: loop body
LE: loop exit
PB: predicated region body
PF: predicated region fallthrough
CT: control target
= control target key end

     0   :  { %s1170_s0 = inlined_call_operand.hbm [shape: f32[2,8,8], index: 0, kind: input, shape index: {}]   ;;  %s1171_s1 = inlined_call_operand.hbm [shape: f32[2,8,8], index: 1, kind: input, shape index: {}]   ;;  %s1172_s2 = inlined_call_operand.hbm [shape: f32[2,8,8], index: 2, kind: input, shape index: {}]   ;;  %s1173_s3 = inlined_call_operand.hbm [shape: f32[2,8,8], index: 3, kind: output, shape index: {}]  }
   0x1   :  { %1177 = sst [smem:[#allocation17_spill]] %s1171_s1 }
   0x2   :  { %8 = vsyncpa [#allocation6], 0 }
   0x3   :  { %10 = vsyncpa [#allocation6 + $0x1], 0 }
   0x4   :  { %11 = vsyncpa [#allocation9], 0 }
   0x5   :  { %13 = vsyncpa [#allocation9 + $0x1], 0 }
   0x6   :  { %14 = vsyncpa [#allocation7], 0 }
   0x7   :  { %16 = vsyncpa [#allocation7 + $0x1], 0  ;;  %s960_s12 = smov 0   ;;  %s962_s13 = smov 0  }
   0x8   :  { %s964_s14 = smov 0   ;;  %s966_s15 = smov 0  }
   0x9   :  { %s968_s16 = smov 0   ;;  %s970_s17 = smov 0  }
   0xa LB: > { %1178 = sst [smem:[#allocation15_spill]] %s926_s16  ;;  %s991_s18 = sadd.s32 4294967295, %s930_s17   ;;  %s930_s17 = sphi %s970_s17, %s22_s17   ;;  %s926_s16 = sphi %s968_s16, %s1190_s16   ;;  %s922_s15 = sphi %s966_s15, %s1189_s15   ;;  %s918_s14 = sphi %s964_s14, %s1193_s14   ;;  %s914_s13 = sphi %s962_s13, %s1192_s13   ;;  %s910_s12 = sphi %s960_s12, %s1191_s12  }
   0xb   : > { %s643_s19 = sadd.s32 4294967294, %s930_s17   ;;  %s41_s20 = sadd.s32 1, %s926_s16 }
   0xc   : > { %s50_s21 = sadd.s32 1, %s918_s14  ;;  %p43_p0 = scmp.ge.s32.totalorder %s41_s20, 2 }
   0xd   : > { %p57_p1 = scmp.ne.s32.totalorder %s918_s14, %s914_s13  ;;  %p58_p2 = scmp.eq.s32.totalorder %s930_s17, 0 }
   0xe   : > { %p63_p3 = scmp.ne.s32.totalorder %s914_s13, %s910_s12  ;;  %s1195_s20 = smov (%p43_p0, %s41_s20), 0 }
   0xf   : > { %1179 = sst [smem:[#allocation16_spill]] %s1195_s20  ;;  %p1003_p4 = por %p58_p2, %p57_p1 }
  0x10   : > { %p64_p5 = scmp.eq.s32.totalorder %s991_s18, 0  ;;  %s45_s23 = ssub.s32 %s926_s16, %s1195_s20 }
  0x11   : > { %p145_p6 = scmp.eq.s32.totalorder %s991_s18, 1  ;;  %p48_p7 = scmp.eq.s32.totalorder %s45_s23, 0 }
  0x12   : > { %p1011_p8 = por %p64_p5, %p63_p3  ;;  %p151_p10 = scmp.eq.s32.totalorder %s643_s19, 1 }
  0x13   : > { %p1015_p9 = por %p145_p6, %p57_p1  ;;  %p700_p13 = scmp.lt.s32.totalorder %s930_s17, 2 }
  0x14   : > { %s1020_s26 = scalar_select %p48_p7, %s918_s14, %s50_s21  }
  0x15   : > { %p1022_p11 = por %p151_p10, %p63_p3  ;;  %s1174_s28 = sand.u32 1, %s918_s14  }
  0x16   : > { %s1031_s29 = sshll.u32 %s1174_s28, 3  ;;  %s1034_s30 = sshll.u32 %s926_s16, 7 }
  0x17   : > { %p1038_p0 = pnand %p700_p13, %p1003_p4  ;;  %s190_s5 = sand.u32 1, %s930_s17  }
  0x18   : > { %s1185_s1 = sld [smem:[#allocation17_spill]]  ;;  %s194_s9 = scalar_lea.vmem [#allocation8], %s1031_s29 }
  0x19   : > { %s202_s10 = sshll.u32 %s194_s9, 4  ;;  %p652_p1 = scmp.ge.s32.totalorder %s930_s17, 1  ;;  %s203_s10 = int_to_ptr.vmem [resolvable:$true] %s202_s10 }
  0x1a   : > { %p226_p2 = scmp.lt.s32.totalorder %s930_s17, 3  ;;  %s1050_s11 = scalar_lea.sflag [#allocation9], %s190_s5 }
  0x1b   : > { %p764_p3 = pneg %p1038_p0  ;;  %s775_s19 = scalar_lea.vmem %s203_s10, 128 }
  0x1c   : > { %p776_p4 = scmp.ne.s32.totalorder %s203_s10, %s775_s19  ;;  %s932_s21 = smov [#allocation8]  }
  0x1d   : > { %s780_s22 = sshll.u32 %s932_s21, 4  ;;  %s781_s22 = int_to_ptr.vmem [resolvable:$false] %s780_s22 }
  0x1e   : > { %s200_s8 = scalar_lea.hbm %s1185_s1, %s1034_s30  ;;  %p778_p5 = pnand %p776_p4, %p764_p3 }
  0x1f   : > { %s782_s23 = scalar_lea.vmem %s781_s22, 256  ;;  %p783_p7 = scmp.lt.s32.totalorder %s203_s10, %s781_s22 }
  0x20   : > { %p779_p6 = pneg %p778_p5  ;;  %p784_p10 = scmp.lt.s32.totalorder %s782_s23, %s775_s19 }
  0x22   : > { %p785_p13 = por %p784_p10, %p783_p7 }
  0x24   : > { %p786_p12 = pnand %p785_p13, %p779_p6 }
  0x26   : > { %789 = shalt.err (!%p786_p12)
}
  0x27   : > { %692 = dma.hbm_to_vmem [thread:$0]  (!%p1038_p0), %s200_s8, 128, %s203_s10, %s1050_s11  }
  0x28   : > { %p1064_p4 = pnand %p652_p1, %p226_p2  ;;  %s181_s9 = scalar_lea.hbm %s1170_s0, %s1034_s30 }
  0x29   : > { %s175_s19 = scalar_lea.vmem [#allocation5], %s1031_s29  ;;  %s219_s28 = scalar_lea.hbm %s1172_s2, %s1034_s30 }
  0x2a   : > { %s183_s21 = sshll.u32 %s175_s19, 4  ;;  %s1187_s1 = sand.u32 1, %s918_s14   ;;  %s184_s21 = int_to_ptr.vmem [resolvable:$true] %s183_s21 }
  0x2b   : > { %s172_s20 = scalar_lea.sflag [#allocation6], %s1187_s1  ;;  %s803_s8 = scalar_lea.vmem %s184_s21, 128 }
  0x2c   : > { %p804_p12 = scmp.ne.s32.totalorder %s184_s21, %s803_s8  ;;  %s933_s10 = smov [#allocation5]  }
  0x2d   : > { %s808_s16 = sshll.u32 %s933_s10, 4  ;;  %s809_s16 = int_to_ptr.vmem [resolvable:$false] %s808_s16 }
  0x2e   : > { %p806_p1 = pnand %p804_p12, %p764_p3  ;;  %s810_s6 = scalar_lea.vmem %s809_s16, 256 }
  0x2f   : > { %p811_p5 = scmp.lt.s32.totalorder %s184_s21, %s809_s16  ;;  %p812_p6 = scmp.lt.s32.totalorder %s810_s6, %s803_s8 }
  0x30   : > { %p807_p2 = pneg %p806_p1 }
  0x31   : > { %p813_p7 = por %p812_p6, %p811_p5 }
  0x33   : > { %p814_p10 = pnand %p813_p7, %p807_p2 }
  0x35   : > { %817 = shalt.err (!%p814_p10)
}
  0x36   : > { %689 = dma.hbm_to_vmem [thread:$0]  (!%p1038_p0), %s181_s9, 128, %s184_s21, %s172_s20  }
  0x37   : > { %s213_s1 = scalar_lea.vmem [#allocation10], %s1031_s29  ;;  %s934_s22 = smov [#allocation10]  }
  0x38   : > { %s221_s7 = sshll.u32 %s213_s1, 4  ;;  %s836_s16 = sshll.u32 %s934_s22, 4  ;;  %s222_s7 = int_to_ptr.vmem [resolvable:$true] %s221_s7  ;;  %s837_s16 = int_to_ptr.vmem [resolvable:$false] %s836_s16 }
  0x39   : > { %s831_s19 = scalar_lea.vmem %s222_s7, 128  ;;  %s838_s23 = scalar_lea.vmem %s837_s16, 256 }
  0x3a   : > { %p832_p13 = scmp.ne.s32.totalorder %s222_s7, %s831_s19  ;;  %p839_p2 = scmp.lt.s32.totalorder %s222_s7, %s837_s16 }
  0x3b   : > { %p840_p5 = scmp.lt.s32.totalorder %s838_s23, %s831_s19 }
  0x3c   : > { %p834_p12 = pnand %p832_p13, %p764_p3 }
  0x3d   : > { %p841_p6 = por %p840_p5, %p839_p2 }
  0x3e   : > { %p835_p1 = pneg %p834_p12 }
  0x40   : > { %p842_p7 = pnand %p841_p6, %p835_p1 }
  0x42   : > { %845 = shalt.err (!%p842_p7)
}
  0x43   : > { %695 = dma.hbm_to_vmem [thread:$0]  (!%p1038_p0), %s219_s28, 128, %s222_s7, %s1050_s11  }
  0x44   : > { %230 = sbr.rel (%p1064_p4) target bundleno = 867 (0x363), region = 32  ;;  %s1099_s9 = sand.u32 (!%p1064_p4), 1, %s914_s13  }
  0x45   : > { %s1102_s21 = sshll.u32 (!%p1064_p4), %s1099_s9, 3  ;;  %s233_s4 = scalar_lea.sflag (!%p1064_p4), [#allocation6], %s1099_s9 }
  0x46   : > { %s236_s8 = scalar_lea.vmem (!%p1064_p4), [#allocation5], %s1102_s21 }
  0x49   : > { %897 = dma.done.wait (%p1011_p8), %s233_s4, 128  }
  0x4a   : > { %899 = vsyncadd (%p1011_p8), %s233_s4, 4294967168  ;;  %s241_s28 = sand.u32 1, %s991_s18   ;;  %s245_s11 = scalar_lea.vmem [#allocation8], %s1102_s21 }
  0x4b   : > { %s242_s30 = scalar_lea.sflag [#allocation9], %s241_s28 }
  0x4c   : > { %901 = dma.done.wait (%p1011_p8), %s242_s30, 256  }
  0x4d   : > { %903 = vsyncadd (%p1011_p8), %s242_s30, 4294967040  ;;  %vm294_vm0 = vcmask 64512   ;;  %v935_v0 = vmov 0.0   ;;  %vm936_vm1 = vmmov 0   ;;  %v297_v1 = vld [vmem:[%s245_s11] sm:$0xff]  ;;  %v296_v2 = vld [vmem:[%s236_s8] sm:$0xff] }
  0x4e   : > { %668 = vmatprep.subr.mxu0 %v935_v0  ;;  %295 = vst.msk [vmem:[#allocation4] sm:$0xff] %vm294_vm0, %v935_v0  ;;  %670 = vmatprep.mubr.msk.f32.mxu0 %vm936_vm1, %v935_v0  ;;  %vm291_vm2 = vcmask 7168   ;;  %v937_v3 = vmov -inf   ;;  %v938_v7 = vmov 0   ;;  %s254_s18 = scalar_lea.vmem [#allocation10], %s1102_s21  ;;  %s661_s24 = sshll.u32 %s922_s15, 7 }
  0x4f   : > { %673 = vmatprep.subr.mxu1 %v935_v0  ;;  %675 = vmatprep.mubr.msk.f32.mxu1 %vm936_vm1, %v935_v0  ;;  %292 = vst.msk [vmem:[#allocation2] sm:$0xff] %vm291_vm2, %v937_v3  ;;  %293 = vst.msk [vmem:[#allocation3] sm:$0xff] %vm291_vm2, %v935_v0  ;;  %v298_v12 = vld [vmem:[%s254_s18] sm:$0xff]  ;;  %s286_s5 = scalar_lea.vmem [#allocation11], %s1102_s21  ;;  %s512_s7 = scalar_lea.hbm %s1173_s3, %s661_s24 }
  0x50   : > { %669 = vmatpush3.xpose.msk.msra.mxu0 %vm294_vm0, %v297_v1  ;;  %754 = vset.pattern.permute.xlu0 %v938_v7  ;;  %s514_s10 = sshll.u32 %s286_s5, 4  ;;  %s500_s19 = scalar_lea.sflag [#allocation7], %s1099_s9  ;;  %s515_s10 = int_to_ptr.vmem [resolvable:$true] %s514_s10 }
  0x51   : > { %755 = vset.pattern.permute.xlu1 %v938_v7  ;;  %674 = vmatpush3.msra.mxu1 %v298_v12  ;;  %s846_s22 = scalar_lea.vmem %s515_s10, 128  ;;  %s939_s16 = smov [#allocation11]  }
  0x52   : > { %p847_p8 = scmp.ne.s32.totalorder %s515_s10, %s846_s22  ;;  %s850_s15 = sshll.u32 %s939_s16, 4  ;;  %s851_s15 = int_to_ptr.vmem [resolvable:$false] %s850_s15 }
  0x53   : > { %671 = vmatmul.mubr.msk.f32.vlgmr.msra.gmra.mxu0 %vm294_vm0, %v296_v2  ;;  %s852_s23 = scalar_lea.vmem %s851_s15, 256  ;;  %p853_p4 = scmp.lt.s32.totalorder %s515_s10, %s851_s15 }
  0x54   : > { %p848_p0 = pnand %p847_p8, %p1015_p9  ;;  %p854_p10 = scmp.lt.s32.totalorder %s852_s23, %s846_s22 }
  0x55   : > { %v400_v29 = vld [vmem:[#allocation4] sm:$0xff] }
  0x56   : > { %v376_v8 = vld [vmem:[#allocation2] sm:$0xff]  ;;  %v392_v20 = vld [vmem:[#allocation3] sm:$0xff]  ;;  %p849_p3 = pneg %p848_p0  ;;  %p855_p13 = por %p854_p10, %p853_p4 }
  0x58   : > { %p856_p12 = pnand %p855_p13, %p849_p3 }
 0x113   : > { %v372_v4 = vpop.f32.mrf.mxu0 }
 0x114   : > { %v377_v5 = vsel %vm294_vm0, %v372_v4, -inf }
 0x115   : > { %378 = vmax.xlane.f32.xlu0 %v377_v5  ;;  %v672_v6 = vpop.f32.mrf.mxu0 }
 0x19e   : > { %v379_v9 = vpop.xlane.xlu0 %378 }
 0x19f   : > { %v380_v10 = vmax.f32 %v376_v8, %v379_v9 }
 0x1a1   : > { %v381_v11 = vsub.f32 %v376_v8, %v380_v10  ;;  %482 = vst.msk [vmem:[#allocation2] sm:$0xff] %vm291_vm2, %v380_v10  ;;  %386 = vperm.xlu0 %754, %v380_v10  }
 0x1a3   : > { %v382_v17 = vmul.f32 1.442695, %v381_v11 }
 0x21c   : > { %v387_v13 = vpop.permute.xlu0 %386 }
 0x21d   : > { %v389_v14 = vsub.f32 %v372_v4, %v387_v13 }
 0x21f   : > { %v390_v15 = vmul.f32 1.442695, %v389_v14 }
 0x221   : > { %756 = vpow2.f32 %v390_v15 }
 0x222   : > { %758 = vpow2.f32 %v382_v17 }
 0x22e   : > { %v757_v16 = vpop.eup %756 }
 0x22f   : > { %676 = vmatmul.mubr.msk.f32.vlgmr.msra.gmra.mxu1 %vm294_vm0, %v757_v16  ;;  %v394_v18 = vsel %vm294_vm0, %v757_v16, 0.0  ;;  %v759_v19 = vpop.eup %758 }
 0x230   : > { %395 = vadd.xlane.f32.xlu1 %v394_v18  ;;  %v393_v21 = vmul.f32 %v759_v19, %v392_v20 }
 0x241   : > { %403 = vperm.xlu1 %755, %v759_v19  }
 0x2b9   : > { %v396_v22 = vpop.xlane.xlu1 %395 }
 0x2ba   : > { %v397_v23 = vadd.f32 %v396_v22, %v393_v21 }
 0x2bc   : > { %399 = vst.msk [vmem:[#allocation3] sm:$0xff] %vm291_vm2, %v397_v23 }
 0x2bd   : > { %v404_v30 = vpop.permute.xlu1 %403 }
 0x2be   : > { %v406_v31 = vmul.f32 %v404_v30, %v400_v29 }
 0x2c3   : > { %v486_v24 = vld [vmem:[#allocation3] sm:$0xff] }
 0x2c4   : > { %760 = vrcp.f32 %v486_v24 }
 0x2d1   : > { %v761_v25 = vpop.eup %760 }
 0x2d2   : > { %v488_v26 = vmul.f32 %v761_v25, %v486_v24 }
 0x2d4   : > { %v489_v27 = vsub.f32 2.0, %v488_v26 }
 0x2d6   : > { %v490_v28 = vmul.f32 %v761_v25, %v489_v27 }
 0x2d8   : > { %494 = vperm.xlu1 %755, %v490_v28  }
 0x2ef   : > { %v476_v32 = vpop.f32.mrf.mxu1 }
 0x2f0   : > { %v480_v33 = vadd.f32 %v476_v32, %v406_v31 }
 0x2f1   : > { %v677_v34 = vpop.f32.mrf.mxu1 }
 0x2f2   : > { %481 = vst.msk [vmem:[#allocation4] sm:$0xff] %vm294_vm0, %v480_v33 }
 0x2f9   : > { %v491_v35 = vld [vmem:[#allocation4] sm:$0xff] }
 0x353   : > { %v495_v36 = vpop.permute.xlu1 %494 }
 0x354   : > { %v497_v37 = vmul.f32 %v495_v36, %v491_v35 }
 0x356   : > { %498 = vst.msk [vmem:[%s286_s5] sm:$0xff] %vm294_vm0, %v497_v37 }
 0x357   : > { %859 = shalt.err (!%p856_p12)
}
 0x358   : > { %s860_s20 = scalar_lea.hbm %s512_s7, 128  ;;  %s864_s21 = scalar_lea.hbm %s1173_s3, 256 }
 0x359   : > { %p861_p1 = scmp.ne.s32.totalorder %s512_s7, %s860_s20  ;;  %p865_p6 = scmp.lt.s32.totalorder %s512_s7, %s1173_s3 }
 0x35a   : > { %p866_p7 = scmp.lt.s32.totalorder %s864_s21, %s860_s20 }
 0x35b   : > { %p862_p2 = pnand %p861_p1, %p1015_p9 }
 0x35c   : > { %p867_p8 = por %p866_p7, %p865_p6 }
 0x35d   : > { %p863_p5 = pneg %p862_p2 }
 0x35f   : > { %p868_p0 = pnand %p867_p8, %p863_p5 }
 0x361   : > { %871 = shalt.err (!%p868_p0)
}
 0x362   : > { %684 = dma.vmem_to_hbm [thread:$0]  (%p1015_p9), %s515_s10, 128, %s512_s7, %s500_s19  }
 0x363 PF: > { %s526_s28 = sand.u32 1, %s910_s12   ;;  %p1188_p3 = scmp.ge.s32.totalorder %s930_s17, 2 }
 0x364   : > { %s527_s30 = scalar_lea.sflag [#allocation7], %s526_s28 }
 0x365   : > { %p697_p4 = pnand %p1188_p3, %p1022_p11 }
 0x367   : > { %p698_p10 = pneg %p697_p4 }
 0x369   : > { %905 = dma.done.wait (%p698_p10), %s527_s30, 128  }
 0x36a   : > { %907 = vsyncadd (%p698_p10), %s527_s30, 4294967168  ;;  %s22_s17 = sadd.s32 1, %s930_s17   ;;  %s1189_s15 = sld [smem:[#allocation15_spill]] }
 0x36b   : > { %p19_p13 = scmp.ge.s32.totalorder %s22_s17, 4   ;;  %s1190_s16 = sld [smem:[#allocation16_spill]] }
 0x36c   : > { %s1191_s12 = smov %s914_s13  ;;  %s1192_s13 = smov %s918_s14 }
 0x36d   : > { %s1193_s14 = smov %s1020_s26  ;;  %21 = sbr.rel (!%p19_p13) target bundleno = 10 (0xa), region = 109 }
 0x372   :  { %532 = vsyncpa [#allocation6], 1 }
 0x373   :  { %534 = vsyncpa [#allocation6 + $0x1], 1 }
 0x374   :  { %535 = vsyncpa [#allocation9], 1 }
 0x375   :  { %537 = vsyncpa [#allocation9 + $0x1], 1 }
 0x376   :  { %538 = vsyncpa [#allocation7], 1 }
 0x377   :  { %540 = vsyncpa [#allocation7 + $0x1], 1 }

</bundles_post_ra>
